<compile_context>
chip_gen: v7x
topology: tpu7x:2x2x1
jax: 0.10.0
libtpu: 0.0.40
codegen_flags: <defaults>
</compile_context>

<pallas_src>
import functools

import jax
import jax.numpy as jnp
from jax import lax
from jax.experimental import pallas as pl
from jax.experimental.pallas import tpu as pltpu

NUM_COND_FRAMES = 9     # module default
C = 3                   # self.c in the module

_MAX_BLOCK_ROWS = 1024  # (rows, 128) rows per grid step -> ~5 MiB f32 frame data / step
_CHUNK_ROWS = 64        # rows per inner iteration (bounds live vregs to ~24)


def _sse_kernel(coef_ref, x_ref, out_ref, *, num_frames, rows, chunk):
    """Per-(batch, row-tile) sum of squared errors, reduced over rows.

    coef_ref : SMEM (num_frames + 1,) f32 = [c_0..c_{L-1}, -1.0, bias]
               (the -1.0 entry folds the subtraction of the target frame)
    x_ref    : VMEM (1, num_frames, rows, 128) in the input dtype
    out_ref  : VMEM (1, 1, 1, 128) f32 -- per-lane SSE summed over this tile's rows
    """
    bias = coef_ref[num_frames]

    def chunk_sse(r0, nrows):
        # err = bias + sum_i coef[i] * frame_i   (scalar-broadcast VPU FMAs)
        err = jnp.full((nrows, 128), bias, dtype=jnp.float32)
        for i in range(num_frames):              # unrolled over the 10 frames
            fr = x_ref[0, i, pl.ds(r0, nrows), :].astype(jnp.float32)
            err = err + coef_ref[i] * fr
        return jnp.sum(err * err, axis=0, keepdims=True)     # (1, 128), XLU reduce

    acc = jnp.zeros((1, 128), dtype=jnp.float32)
    n_full = rows // chunk
    rem = rows - n_full * chunk

    if n_full > 0:
        def body(ci, a):
            r0 = pl.multiple_of(ci * chunk, chunk)
            return a + chunk_sse(r0, chunk)
        acc = lax.fori_loop(0, n_full, body, acc)
    if rem > 0:
        acc = acc + chunk_sse(n_full * chunk, rem)

    out_ref[0, 0] = acc


def _fold_weights(W, bias, num_cond_frames):
    """Fold W over [x_use; lagged diffs] into per-frame coefficients.

    Returns coef of shape (num_cond_frames + 2,):
        [c_0 .. c_{L-1}, -1.0, bias]
    so that err = bias + sum_i coef[i] * frame_i with frame_L = target frame.
    """
    L = num_cond_frames
    rows = [[1.0 if m == j else 0.0 for m in range(L)] for j in range(L)]
    for k in range(L - 1):                 # same ordering as get_lagged_differences
        for j in range(L - k - 1):
            r = [0.0] * L
            r[j] += 1.0
            r[j + k + 1] -= 1.0
            rows.append(r)
    M = jnp.asarray(rows, dtype=jnp.float32)             # (num_features, L)
    c = jnp.matmul(W.astype(jnp.float32), M)[0]          # (L,)
    return jnp.concatenate([
        c,
        jnp.asarray([-1.0], dtype=jnp.float32),
        jnp.reshape(bias.astype(jnp.float32), (-1,))[:1],
    ])                                                    # (L + 2,)


def simple_linear_model_loss(x, W, bias, *, num_cond_frames=NUM_COND_FRAMES, c=C):
    """Forward pass of SimpleLinearModel: returns the scalar MSE loss."""
    B, T, Cc, H, Wd = x.shape
    L = num_cond_frames
    F = L + 1                              # conditioning frames + target frame
    assert T >= F and Cc == c
    num_features = L + (L - 1) * L // 2
    assert W.shape == (1, num_features) and bias.shape == (1, 1)

    N = Cc * H * Wd
    R = pl.cdiv(N, 128)                    # 128-lane rows needed per frame
    if R <= _MAX_BLOCK_ROWS:
        block_rows, rpad = R, R
    else:
        block_rows = _MAX_BLOCK_ROWS
        rpad = pl.cdiv(R, block_rows) * block_rows
    npad = rpad * 128
    num_tiles = rpad // block_rows

    xr = x.reshape(B, T, N)                # contiguous collapse: no HBM copy
    if npad != N:
        # Needs a copy anyway -> also drop unused trailing frames in the same pass.
        # Zero-padded lanes each contribute exactly bias^2; corrected below.
        xr = jnp.pad(xr[:, :F], ((0, 0), (0, 0), (0, npad - N)))
        t_eff = F
    else:
        t_eff = T                          # no copy; BlockSpec reads only frames 0..F-1
    x4 = xr.reshape(B, t_eff, rpad, 128)

    coef = _fold_weights(W, bias, L)       # (F + 1,) f32 -> SMEM

    chunk = min(_CHUNK_ROWS, block_rows)
    kernel = functools.partial(_sse_kernel, num_frames=F, rows=block_rows, chunk=chunk)

    itemsize = jnp.dtype(x.dtype).itemsize
    cost = pl.CostEstimate(
        flops=int(B) * npad * (2 * F + 2),
        transcendentals=0,
        bytes_accessed=int(B) * (F * npad * itemsize + num_tiles * 128 * 4),
    )

    partial = pl.pallas_call(
        kernel,
        out_shape=jax.ShapeDtypeStruct((B, num_tiles, 1, 128), jnp.float32),
        grid_spec=pltpu.PrefetchScalarGridSpec(
            num_scalar_prefetch=0,
            grid=(B, num_tiles),
            in_specs=[
                pl.BlockSpec(memory_space=pltpu.MemorySpace.SMEM),       # coef
                pl.BlockSpec((1, F, block_rows, 128),                    # frames 0..F-1
                             lambda b, t: (b, 0, t, 0)),
            ],
            out_specs=pl.BlockSpec((1, 1, 1, 128), lambda b, t: (b, t, 0, 0)),
        ),
        compiler_params=pltpu.CompilerParams(
            dimension_semantics=("parallel", "parallel"),
            vmem_limit_bytes=32 * 1024 * 1024,   # v5e default scoped limit is 16 MiB
        ),
        cost_estimate=cost,
    )(coef, x4)

    sse = jnp.sum(partial)
    if npad != N:
        sse = sse - (B * (npad - N)) * coef[F] ** 2      # remove padded-lane bias^2
    return sse / (B * N)


def reference_loss(x, W, bias, num_cond_frames=NUM_COND_FRAMES, c=C):
    """Pure-JAX replica of the PyTorch forward() for validation."""
    x_use = x[:, :num_cond_frames].astype(jnp.float32)
    x_true = x[:, num_cond_frames].astype(jnp.float32)
    L = num_cond_frames
    diffs = [x_use[:, 0:L - k - 1] - x_use[:, k + 1:L] for k in range(L - 1)]
    features = jnp.concatenate([x_use] + diffs, axis=1)
    B = x.shape[0]
    features = features.reshape(B, features.shape[1], -1)
    pred = jnp.matmul(W.astype(jnp.float32), features) + bias.astype(jnp.float32)
    pred = pred.reshape(B, c, x.shape[3], x.shape[4])
    return jnp.mean((pred - x_true) ** 2)


if __name__ == "__main__":
    key = jax.random.PRNGKey(0)
    kx, kw, kb, kx2 = jax.random.split(key, 4)

    # Module's __init__ uses zero params; use non-zero deterministic params so
    # the linear path is actually exercised.
    num_features = NUM_COND_FRAMES + (NUM_COND_FRAMES - 1) * NUM_COND_FRAMES // 2  # 45
    Wp = 0.1 * jax.random.normal(kw, (1, num_features), dtype=jnp.float32)
    bias = 0.1 * jax.random.normal(kb, (1, 1), dtype=jnp.float32)

    # Primary check: x (2, 10, 3, 16, 16) -> N = 768 = 6*128 (copy-free path).
    x = jax.random.normal(kx, (2, NUM_COND_FRAMES + 1, C, 16, 16), dtype=jnp.float32)
    loss = jax.block_until_ready(simple_linear_model_loss(x, Wp, bias))
    ref = reference_loss(x, Wp, bias)
    assert jnp.allclose(loss, ref, rtol=1e-5, atol=1e-5), (float(loss), float(ref))

    # Secondary check: non-128-divisible pixels + extra frames
    # (exercises the pad + bias^2 correction and frame-subset BlockSpec).
    x2 = jax.random.normal(kx2, (2, NUM_COND_FRAMES + 2, C, 5, 5), dtype=jnp.float32)
    loss2 = jax.block_until_ready(simple_linear_model_loss(x2, Wp, bias))
    ref2 = reference_loss(x2, Wp, bias)
    assert jnp.allclose(loss2, ref2, rtol=1e-5, atol=1e-5), (float(loss2), float(ref2))

    print("KERNEL_OK")
</pallas_src>

<mosaic_0001>
module attributes {stable_mosaic.version = 11 : i64} {
  func.func @_sse_kernel(%arg0: i32, %arg1: i32, %arg2: memref<11xf32, #tpu.memory_space<smem>>, %arg3: memref<1x10x6x128xf32, #tpu.memory_space<vmem>>, %arg4: memref<1x1x1x128xf32, #tpu.memory_space<vmem>>) attributes {dimension_semantics = [#tpu.dimension_semantics<parallel>, #tpu.dimension_semantics<parallel>], iteration_bounds = array<i64: 2, 1>, scalar_prefetch = 0 : i64, scratch_operands = 0 : i64, tpu.core_type = #tpu.core_type<tc>, window_params = [{transform_indices = @transform_0, window_bounds = array<i64: 11>}, {transform_indices = @transform_1, window_bounds = array<i64: 1, 10, 6, 128>}, {transform_indices = @transform_2, window_bounds = array<i64: 1, 1, 1, 128>}]} {
    %c10 = arith.constant 10 : index
    %0 = memref.load %arg2[%c10] : memref<11xf32, #tpu.memory_space<smem>>
    %cst = arith.constant 0.000000e+00 : f32
    %1 = vector.broadcast %cst : f32 to vector<1x128xf32>
    %c0_i32 = arith.constant 0 : i32
    %c6_i32 = arith.constant 6 : i32
    %2 = arith.muli %c0_i32, %c6_i32 : i32
    %3 = tpu.assume_multiple %2, 6 : i32
    %4 = vector.broadcast %0 : f32 to vector<6x128xf32>
    %c0 = arith.constant 0 : index
    %c0_0 = arith.constant 0 : index
    %5 = arith.index_cast %3 : i32 to index
    %c0_1 = arith.constant 0 : index
    %6 = vector.load %arg3[%c0, %c0_0, %5, %c0_1] : memref<1x10x6x128xf32, #tpu.memory_space<vmem>>, vector<1x1x6x128xf32>
    %7 = vector.shape_cast %6 : vector<1x1x6x128xf32> to vector<6x128xf32>
    %c0_2 = arith.constant 0 : index
    %8 = memref.load %arg2[%c0_2] : memref<11xf32, #tpu.memory_space<smem>>
    %9 = vector.broadcast %8 : f32 to vector<6x128xf32>
    %10 = arith.mulf %9, %7 : vector<6x128xf32>
    %11 = arith.addf %4, %10 : vector<6x128xf32>
    %c0_3 = arith.constant 0 : index
    %c1 = arith.constant 1 : index
    %12 = arith.index_cast %3 : i32 to index
    %c0_4 = arith.constant 0 : index
    %13 = vector.load %arg3[%c0_3, %c1, %12, %c0_4] : memref<1x10x6x128xf32, #tpu.memory_space<vmem>>, vector<1x1x6x128xf32>
    %14 = vector.shape_cast %13 : vector<1x1x6x128xf32> to vector<6x128xf32>
    %c1_5 = arith.constant 1 : index
    %15 = memref.load %arg2[%c1_5] : memref<11xf32, #tpu.memory_space<smem>>
    %16 = vector.broadcast %15 : f32 to vector<6x128xf32>
    %17 = arith.mulf %16, %14 : vector<6x128xf32>
    %18 = arith.addf %11, %17 : vector<6x128xf32>
    %c0_6 = arith.constant 0 : index
    %c2 = arith.constant 2 : index
    %19 = arith.index_cast %3 : i32 to index
    %c0_7 = arith.constant 0 : index
    %20 = vector.load %arg3[%c0_6, %c2, %19, %c0_7] : memref<1x10x6x128xf32, #tpu.memory_space<vmem>>, vector<1x1x6x128xf32>
    %21 = vector.shape_cast %20 : vector<1x1x6x128xf32> to vector<6x128xf32>
    %c2_8 = arith.constant 2 : index
    %22 = memref.load %arg2[%c2_8] : memref<11xf32, #tpu.memory_space<smem>>
    %23 = vector.broadcast %22 : f32 to vector<6x128xf32>
    %24 = arith.mulf %23, %21 : vector<6x128xf32>
    %25 = arith.addf %18, %24 : vector<6x128xf32>
    %c0_9 = arith.constant 0 : index
    %c3 = arith.constant 3 : index
    %26 = arith.index_cast %3 : i32 to index
    %c0_10 = arith.constant 0 : index
    %27 = vector.load %arg3[%c0_9, %c3, %26, %c0_10] : memref<1x10x6x128xf32, #tpu.memory_space<vmem>>, vector<1x1x6x128xf32>
    %28 = vector.shape_cast %27 : vector<1x1x6x128xf32> to vector<6x128xf32>
    %c3_11 = arith.constant 3 : index
    %29 = memref.load %arg2[%c3_11] : memref<11xf32, #tpu.memory_space<smem>>
    %30 = vector.broadcast %29 : f32 to vector<6x128xf32>
    %31 = arith.mulf %30, %28 : vector<6x128xf32>
    %32 = arith.addf %25, %31 : vector<6x128xf32>
    %c0_12 = arith.constant 0 : index
    %c4 = arith.constant 4 : index
    %33 = arith.index_cast %3 : i32 to index
    %c0_13 = arith.constant 0 : index
    %34 = vector.load %arg3[%c0_12, %c4, %33, %c0_13] : memref<1x10x6x128xf32, #tpu.memory_space<vmem>>, vector<1x1x6x128xf32>
    %35 = vector.shape_cast %34 : vector<1x1x6x128xf32> to vector<6x128xf32>
    %c4_14 = arith.constant 4 : index
    %36 = memref.load %arg2[%c4_14] : memref<11xf32, #tpu.memory_space<smem>>
    %37 = vector.broadcast %36 : f32 to vector<6x128xf32>
    %38 = arith.mulf %37, %35 : vector<6x128xf32>
    %39 = arith.addf %32, %38 : vector<6x128xf32>
    %c0_15 = arith.constant 0 : index
    %c5 = arith.constant 5 : index
    %40 = arith.index_cast %3 : i32 to index
    %c0_16 = arith.constant 0 : index
    %41 = vector.load %arg3[%c0_15, %c5, %40, %c0_16] : memref<1x10x6x128xf32, #tpu.memory_space<vmem>>, vector<1x1x6x128xf32>
    %42 = vector.shape_cast %41 : vector<1x1x6x128xf32> to vector<6x128xf32>
    %c5_17 = arith.constant 5 : index
    %43 = memref.load %arg2[%c5_17] : memref<11xf32, #tpu.memory_space<smem>>
    %44 = vector.broadcast %43 : f32 to vector<6x128xf32>
    %45 = arith.mulf %44, %42 : vector<6x128xf32>
    %46 = arith.addf %39, %45 : vector<6x128xf32>
    %c0_18 = arith.constant 0 : index
    %c6 = arith.constant 6 : index
    %47 = arith.index_cast %3 : i32 to index
    %c0_19 = arith.constant 0 : index
    %48 = vector.load %arg3[%c0_18, %c6, %47, %c0_19] : memref<1x10x6x128xf32, #tpu.memory_space<vmem>>, vector<1x1x6x128xf32>
    %49 = vector.shape_cast %48 : vector<1x1x6x128xf32> to vector<6x128xf32>
    %c6_20 = arith.constant 6 : index
    %50 = memref.load %arg2[%c6_20] : memref<11xf32, #tpu.memory_space<smem>>
    %51 = vector.broadcast %50 : f32 to vector<6x128xf32>
    %52 = arith.mulf %51, %49 : vector<6x128xf32>
    %53 = arith.addf %46, %52 : vector<6x128xf32>
    %c0_21 = arith.constant 0 : index
    %c7 = arith.constant 7 : index
    %54 = arith.index_cast %3 : i32 to index
    %c0_22 = arith.constant 0 : index
    %55 = vector.load %arg3[%c0_21, %c7, %54, %c0_22] : memref<1x10x6x128xf32, #tpu.memory_space<vmem>>, vector<1x1x6x128xf32>
    %56 = vector.shape_cast %55 : vector<1x1x6x128xf32> to vector<6x128xf32>
    %c7_23 = arith.constant 7 : index
    %57 = memref.load %arg2[%c7_23] : memref<11xf32, #tpu.memory_space<smem>>
    %58 = vector.broadcast %57 : f32 to vector<6x128xf32>
    %59 = arith.mulf %58, %56 : vector<6x128xf32>
    %60 = arith.addf %53, %59 : vector<6x128xf32>
    %c0_24 = arith.constant 0 : index
    %c8 = arith.constant 8 : index
    %61 = arith.index_cast %3 : i32 to index
    %c0_25 = arith.constant 0 : index
    %62 = vector.load %arg3[%c0_24, %c8, %61, %c0_25] : memref<1x10x6x128xf32, #tpu.memory_space<vmem>>, vector<1x1x6x128xf32>
    %63 = vector.shape_cast %62 : vector<1x1x6x128xf32> to vector<6x128xf32>
    %c8_26 = arith.constant 8 : index
    %64 = memref.load %arg2[%c8_26] : memref<11xf32, #tpu.memory_space<smem>>
    %65 = vector.broadcast %64 : f32 to vector<6x128xf32>
    %66 = arith.mulf %65, %63 : vector<6x128xf32>
    %67 = arith.addf %60, %66 : vector<6x128xf32>
    %c0_27 = arith.constant 0 : index
    %c9 = arith.constant 9 : index
    %68 = arith.index_cast %3 : i32 to index
    %c0_28 = arith.constant 0 : index
    %69 = vector.load %arg3[%c0_27, %c9, %68, %c0_28] : memref<1x10x6x128xf32, #tpu.memory_space<vmem>>, vector<1x1x6x128xf32>
    %70 = vector.shape_cast %69 : vector<1x1x6x128xf32> to vector<6x128xf32>
    %c9_29 = arith.constant 9 : index
    %71 = memref.load %arg2[%c9_29] : memref<11xf32, #tpu.memory_space<smem>>
    %72 = vector.broadcast %71 : f32 to vector<6x128xf32>
    %73 = arith.mulf %72, %70 : vector<6x128xf32>
    %74 = arith.addf %67, %73 : vector<6x128xf32>
    %75 = arith.mulf %74, %74 : vector<6x128xf32>
    %cst_30 = arith.constant dense<0.000000e+00> : vector<128xf32>
    %76 = vector.multi_reduction <add>, %75, %cst_30 [0] : vector<6x128xf32> to vector<128xf32>
    %77 = vector.shape_cast %76 : vector<128xf32> to vector<1x128xf32>
    %78 = arith.addf %1, %77 : vector<1x128xf32>
    %c1_i32 = arith.constant 1 : i32
    %c0_31 = arith.constant 0 : index
    %c0_32 = arith.constant 0 : index
    %c0_33 = arith.constant 0 : index
    %c0_34 = arith.constant 0 : index
    %79 = vector.load %arg4[%c0_31, %c0_32, %c0_33, %c0_34] : memref<1x1x1x128xf32, #tpu.memory_space<vmem>>, vector<1x1x1x128xf32>
    %80 = vector.shape_cast %79 : vector<1x1x1x128xf32> to vector<1x128xf32>
    %81 = vector.shape_cast %78 : vector<1x128xf32> to vector<1x1x1x128xf32>
    tpu.vector_store %arg4[%c0_31, %c0_32, %c0_33, %c0_34], %81 {strides = array<i32>} : memref<1x1x1x128xf32, #tpu.memory_space<vmem>>, vector<1x1x1x128xf32>,
    return
  }
  func.func @transform_0(%arg0: i32, %arg1: i32) -> i32 {
    %c0_i32 = arith.constant 0 : i32
    %c0_i32_0 = arith.constant 0 : i32
    return %c0_i32 : i32
  }
  func.func @transform_1(%arg0: i32, %arg1: i32) -> (i32, i32, i32, i32) {
    %c0_i32 = arith.constant 0 : i32
    %c0_i32_0 = arith.constant 0 : i32
    %c0_i32_1 = arith.constant 0 : i32
    return %arg0, %c0_i32, %arg1, %c0_i32_0 : i32, i32, i32, i32
  }
  func.func @transform_2(%arg0: i32, %arg1: i32) -> (i32, i32, i32, i32) {
    %c0_i32 = arith.constant 0 : i32
    %c0_i32_0 = arith.constant 0 : i32
    %c0_i32_1 = arith.constant 0 : i32
    return %arg0, %arg1, %c0_i32, %c0_i32_0 : i32, i32, i32, i32
  }
}

</mosaic_0001>

<bundles_post_ra>
// kernel: tpu_custom_call.1
= control target key start
LH: loop header
LB: loop body
LE: loop exit
PB: predicated region body
PF: predicated region fallthrough
CT: control target
= control target key end

     0   :  { %7 = vsyncpa [#allocation4], 0  ;;  %s724_s0 = inlined_call_operand.vmem [shape: f32[11], index: 0, kind: input, shape index: {}]   ;;  %s725_s1 = inlined_call_operand.vmem [shape: f32[2,10,6,128], index: 1, kind: input, shape index: {}]   ;;  %s726_s2 = inlined_call_operand.hbm [shape: f32[2,1,1,128], index: 2, kind: output, shape index: {}]  }
   0x1   :  { %8 = vsyncpa [#allocation3], 0 }
   0x2   :  { %10 = vsyncpa [#allocation3 + $0x1], 0  ;;  %s579_s9 = smov 0   ;;  %s581_s10 = smov 0  }
   0x3   :  { %s583_s11 = smov 0   ;;  %s585_s12 = smov 0  }
   0x4   :  { %s587_s13 = smov 0   ;;  %s589_s14 = smov 0  }
   0x5 LB: > { %s366_s15 = sadd.s32 4294967295, %s560_s14   ;;  %s367_s16 = sadd.s32 4294967294, %s560_s14   ;;  %s560_s14 = sphi %s589_s14, %s16_s14   ;;  %s556_s13 = sphi %s587_s13, %s735_s13   ;;  %s552_s12 = sphi %s585_s12, %s734_s12   ;;  %s548_s11 = sphi %s583_s11, %s733_s11   ;;  %s544_s10 = sphi %s581_s10, %s732_s10   ;;  %s540_s9 = sphi %s579_s9, %s731_s9  }
   0x6   : > { %s28_s17 = sadd.s32 1, %s556_s13  ;;  %s86_s18 = sadd.s32 1, %s548_s11 }
   0x7   : > { %p30_p0 = scmp.ge.s32.totalorder %s28_s17, 2  ;;  %p96_p1 = scmp.ne.s32.totalorder %s548_s11, %s544_s10 }
   0x8   : > { %p97_p2 = scmp.eq.s32.totalorder %s366_s15, 1  ;;  %p102_p3 = scmp.ne.s32.totalorder %s544_s10, %s540_s9 }
   0x9   : > { %s737_s17 = smov (%p30_p0, %s28_s17), 0  ;;  %p103_p5 = scmp.eq.s32.totalorder %s367_s16, 1 }
   0xa   : > { %p619_p4 = por %p97_p2, %p96_p1  ;;  %s81_s20 = ssub.s32 %s556_s13, %s737_s17 }
   0xb   : > { %p368_p6 = scmp.ge.s32.totalorder %s560_s14, 1  ;;  %p84_p7 = scmp.eq.s32.totalorder %s81_s20, 0 }
   0xc   : > { %p626_p8 = por %p103_p5, %p102_p3  ;;  %p110_p9 = scmp.lt.s32.totalorder %s560_s14, 3 }
   0xd   : > { %s632_s22 = scalar_select %p84_p7, %s548_s11, %s86_s18  }
   0xe   : > { %p634_p10 = pnand %p368_p6, %p110_p9  ;;  %p638_p11 = scmp.eq.s32.totalorder %s366_s15, 0 }
   0xf   : > { %s123_s27 = sshll.u32 %s724_s0, 4  ;;  %s124_s27 = int_to_ptr.vmem [resolvable:$true] %s123_s27 }
  0x10   : > { %p403_p12 = pneg %p634_p10  ;;  %s463_s28 = scalar_lea.vmem %s124_s27, 16 }
  0x11   : > { %p464_p0 = scmp.ne.s32.totalorder %s124_s27, %s463_s28  ;;  %p471_p5 = scmp.lt.s32.totalorder %s124_s27, %s124_s27 }
  0x12   : > { %p404_p13 = pnand %p638_p11, %p403_p12  ;;  %p472_p6 = scmp.lt.s32.totalorder %s463_s28, %s463_s28 }
  0x14   : > { %p465_p1 = pneg %p404_p13  ;;  %p473_p7 = por %p472_p6, %p471_p5 }
  0x16   : > { %p466_p2 = pnand %p465_p1, %p464_p0 }
  0x18   : > { %p467_p3 = pneg %p466_p2 }
  0x1a   : > { %p474_p9 = pnand %p473_p7, %p467_p3 }
  0x1c   : > { %477 = shalt.err (!%p474_p9)
}
  0x1d   : > { %s562_s29 = smov [#allocation2]   ;;  %147 = sbr.rel (%p634_p10) target bundleno = 98 (0x62), region = 28 }
  0x1e   : > { %406 = dma.vmem_to_smem (!%p404_p13), %s124_s27, 16, %s562_s29, [#allocation4]  }
  0x24   : > { %531 = dma.done.wait (%p638_p11), [#allocation4], 16  }
  0x25   : > { %533 = vsyncadd (%p638_p11), [#allocation4], 4294967280 }
  0x26   : > { %153 = sfence }
  0x27   : > { %p172_p12 = scmp.lt.s32.totalorder %s552_s12, 1  ;;  %s374_s30 = sld [smem:[#allocation2 + $0xa]]  ;;  %vm251_vm0 = vcmask 1045504  }
  0x28   : > { %s183_s4 = sld [smem:[#allocation2]]  ;;  %s376_s5 = sld [smem:[#allocation2 + $0x1]] }
  0x29   : > { %s173_s3 = scalar_select %p172_p12, %s552_s12, 1 }
  0x2a   : > { %s378_s7 = sld [smem:[#allocation2 + $0x2]]  ;;  %s380_s8 = sld [smem:[#allocation2 + $0x3]] }
  0x2b   : > { %s396_s6 = smul.u32 80, %s173_s3  ;;  %s382_s15 = sld [smem:[#allocation2 + $0x4]] }
  0x2c   : > { %s384_s23 = sld [smem:[#allocation2 + $0x5]]  ;;  %s386_s24 = sld [smem:[#allocation2 + $0x6]] }
  0x2d   : > { %s660_s20 = scalar_lea.vmem %s725_s1, %s396_s6  ;;  %v181_v2 = vstv %s374_s30  ;;  %s388_s25 = sld [smem:[#allocation2 + $0x7]] }
  0x2e   : > { %v182_v0 = vld [vmem:[%s660_s20] sm:$0x3f]  ;;  %v375_v1 = vld [vmem:[%s660_s20 + $0x8] sm:$0x3f]  ;;  %v184_v3 = vstv %s183_s4  ;;  %v191_v4 = vstv %s376_s5  ;;  %s390_s26 = sld [smem:[#allocation2 + $0x8]]  ;;  %s392_s27 = sld [smem:[#allocation2 + $0x9]] }
  0x2f   : > { %v377_v5 = vld [vmem:[%s660_s20 + $0x10] sm:$0x3f]  ;;  %v185_v6 = vmul.f32 %v184_v3, %v182_v0  ;;  %v192_v7 = vmul.f32 %v375_v1, %v191_v4  ;;  %v379_v9 = vld [vmem:[%s660_s20 + $0x18] sm:$0x3f]  ;;  %v381_v13 = vld [vmem:[%s660_s20 + $0x20] sm:$0x3f] }
  0x30   : > { %v198_v8 = vstv %s378_s7  ;;  %v205_v10 = vstv %s380_s8  ;;  %v383_v17 = vld [vmem:[%s660_s20 + $0x28] sm:$0x3f]  ;;  %v385_v21 = vld [vmem:[%s660_s20 + $0x30] sm:$0x3f]  ;;  %s170_s28 = sand.u32 1, %s544_s10   ;;  %s393_s3 = sshll.u32 %s552_s12, 4 }
  0x31   : > { %v186_v11 = vadd.f32 %v185_v6, %v181_v2  ;;  %v199_v12 = vmul.f32 %v377_v5, %v198_v8  ;;  %v212_v14 = vstv %s382_s15  ;;  %v206_v16 = vmul.f32 %v379_v9, %v205_v10  ;;  %v387_v25 = vld [vmem:[%s660_s20 + $0x38] sm:$0x3f]  ;;  %v389_v29 = vld [vmem:[%s660_s20 + $0x40] sm:$0x3f]  ;;  %v391_v33 = vld [vmem:[%s660_s20 + $0x48] sm:$0x3f]  ;;  %s679_s6 = scalar_lea.hbm %s726_s2, %s393_s3 }
  0x32   : > { %v219_v18 = vstv %s384_s23  ;;  %v213_v20 = vmul.f32 %v381_v13, %v212_v14  ;;  %v226_v22 = vstv %s386_s24  ;;  %s171_s29 = scalar_lea.vmem [#allocation5], %s170_s28  ;;  %s262_s7 = scalar_lea.sflag [#allocation3], %s170_s28 }
  0x33   : > { %v193_v15 = vadd.f32 %v192_v7, %v186_v11  ;;  %v220_v24 = vmul.f32 %v383_v17, %v219_v18  ;;  %v233_v26 = vstv %s388_s25  ;;  %v227_v28 = vmul.f32 %v385_v21, %v226_v22  ;;  %s275_s30 = sshll.u32 %s171_s29, 4  ;;  %s563_s12 = smov [#allocation5]   ;;  %s674_s30 = int_to_ptr.vmem [resolvable:$true] %s275_s30 }
  0x34   : > { %v240_v30 = vstv %s390_s26  ;;  %v234_v32 = vmul.f32 %v387_v25, %v233_v26  ;;  %v247_v34 = vstv %s392_s27  ;;  %s478_s8 = scalar_lea.vmem %s674_s30, 16  ;;  %s482_s15 = sshll.u32 %s563_s12, 4  ;;  %s483_s15 = int_to_ptr.vmem [resolvable:$false] %s482_s15 }
  0x35   : > { %v200_v19 = vadd.f32 %v199_v12, %v193_v15  ;;  %v241_v36 = vmul.f32 %v389_v29, %v240_v30  ;;  %v248_v38 = vmul.f32 %v391_v33, %v247_v34  ;;  %p479_p10 = scmp.ne.s32.totalorder %s674_s30, %s478_s8  ;;  %s484_s16 = scalar_lea.vmem %s483_s15, 32 }
  0x36   : > { %p485_p0 = scmp.lt.s32.totalorder %s674_s30, %s483_s15  ;;  %p486_p1 = scmp.lt.s32.totalorder %s484_s16, %s478_s8 }
  0x37   : > { %v207_v23 = vadd.f32 %v206_v16, %v200_v19  ;;  %p480_p11 = pnand %p479_p10, %p619_p4 }
  0x38   : > { %p487_p2 = por %p486_p1, %p485_p0 }
  0x39   : > { %v214_v27 = vadd.f32 %v213_v20, %v207_v23  ;;  %p481_p13 = pneg %p480_p11 }
  0x3b   : > { %v221_v31 = vadd.f32 %v220_v24, %v214_v27  ;;  %p488_p3 = pnand %p487_p2, %p481_p13 }
  0x3d   : > { %v228_v35 = vadd.f32 %v227_v28, %v221_v31 }
  0x3f   : > { %v235_v37 = vadd.f32 %v234_v32, %v228_v35 }
  0x41   : > { %v242_v39 = vadd.f32 %v241_v36, %v235_v37 }
  0x43   : > { %v249_v40 = vadd.f32 %v248_v38, %v242_v39 }
  0x45   : > { %v250_v41 = vmul.f32 %v249_v40, %v249_v40 }
  0x47   : > { %v252_v42 = vsel %vm251_vm0, %v250_v41, 0.0 }
  0x48   : > { %v253_v43 = vrot.slane %v252_v42, 4 }
  0x4a   : > { %v254_v44 = vadd.f32 %v253_v43, %v252_v42 }
  0x4c   : > { %v255_v45 = vrot.slane %v254_v44, 2 }
  0x4e   : > { %v256_v46 = vadd.f32 %v255_v45, %v254_v44 }
  0x50   : > { %v257_v47 = vrot.slane %v256_v46, 1 }
  0x52   : > { %v258_v48 = vadd.f32 %v257_v47, %v256_v46 }
  0x54   : > { %260 = vst [vmem:[%s171_s29] sm:$0x1] %v258_v48 }
  0x55   : > { %491 = shalt.err (!%p488_p3)
}
  0x56   : > { %s492_s18 = scalar_lea.hbm %s679_s6, 16  ;;  %s496_s24 = scalar_lea.hbm %s726_s2, 32 }
  0x57   : > { %p493_p5 = scmp.ne.s32.totalorder %s679_s6, %s492_s18  ;;  %p497_p9 = scmp.lt.u32.totalorder %s679_s6, %s726_s2 }
  0x58   : > { %p498_p12 = scmp.lt.u32.totalorder %s496_s24, %s492_s18  ;;  %p500_p11 = scmp.lt.u32.totalorder %s492_s18, %s679_s6 }
  0x59   : > { %p494_p6 = pnand %p493_p5, %p619_p4 }
  0x5a   : > { %p499_p10 = por %p498_p12, %p497_p9 }
  0x5b   : > { %p495_p7 = pneg %p494_p6 }
  0x5c   : > { %p501_p13 = por %p500_p11, %p499_p10 }
  0x5e   : > { %p502_p0 = pnand %p501_p13, %p495_p7 }
  0x60   : > { %505 = shalt.err (!%p502_p0)
}
  0x61   : > { %401 = dma.vmem_to_hbm [thread:$0]  (%p619_p4), %s674_s30, 16, %s679_s6, %s262_s7  }
  0x62 PF: > { %p413_p1 = scmp.ge.s32.totalorder %s560_s14, 2  ;;  %s287_s27 = sand.u32 1, %s540_s9  }
  0x63   : > { %s288_s28 = scalar_lea.sflag [#allocation3], %s287_s27 }
  0x64   : > { %p408_p2 = pnand %p413_p1, %p626_p8 }
  0x66   : > { %535 = dma.done.wait (!%p408_p2), %s288_s28, 16  }
  0x67   : > { %537 = vsyncadd (!%p408_p2), %s288_s28, 4294967280  ;;  %s16_s14 = sadd.s32 1, %s560_s14   ;;  %s731_s9 = smov %s544_s10 }
  0x68   : > { %p13_p3 = scmp.ge.s32.totalorder %s16_s14, 4   ;;  %s732_s10 = smov %s548_s11 }
  0x69   : > { %s733_s11 = smov %s632_s22  ;;  %s734_s12 = smov %s556_s13 }
  0x6a   : > { %s735_s13 = smov %s737_s17  ;;  %15 = sbr.rel (!%p13_p3) target bundleno = 5 (0x5), region = 77 }
  0x71   :  { %292 = vsyncpa [#allocation3], 1 }
  0x72   :  { %294 = vsyncpa [#allocation3 + $0x1], 1 }
  0x73   :  { %295 = vsyncpa [#allocation4], 1 }
  0x74   :  { %297 = vsyncpa [#allocation4 + $0x1], 1 }

</bundles_post_ra>
